<compile_context>
chip_gen: v6e
topology: v6e:2x2x1
jax: 0.10.0
libtpu: 0.0.40
codegen_flags: <defaults>
</compile_context>

<pallas_src>
import jax
import jax.numpy as jnp
from jax.experimental import pallas as pl
from jax.experimental.pallas import tpu as pltpu


def _linear_kernel(x_ref, w_ref, b_ref, o_ref):
    # x_ref: (TB, D) VMEM (streamed, double-buffered)
    # w_ref: (1, D)  VMEM (resident; same block every step)
    # b_ref: (1,)    SMEM scalar
    # o_ref: (TB, 1) VMEM
    xf = x_ref[...].astype(jnp.float32)
    wf = w_ref[...].astype(jnp.float32)            # (1, D) broadcasts over rows
    prod = xf * wf                                 # VPU elementwise
    acc = jnp.sum(prod, axis=-1, keepdims=True)    # XLU lane reduce -> (TB, 1)
    o_ref[...] = (acc + b_ref[0]).astype(o_ref.dtype)


def _round_up(a, m):
    return -(-a // m) * m


def _round_down_pos(a, m):
    return max(m, (a // m) * m)


def _default_vmem_budget_bytes():
    """Scoped-VMEM budget for the kernel's buffers, by TPU generation.

    Default scoped-VMEM limits are 16 MiB (v5e) and 32 MiB (v6e / v7x); we stay
    a few MiB under to leave room for compiler-internal scratch.
    """
    try:
        kind = jax.devices()[0].device_kind.lower()
    except Exception:  # pragma: no cover - defensive; fall back to conservative
        kind = ""
    if ("v6" in kind) or ("v7" in kind):
        return 28 << 20
    return 14 << 20


def _select_rows_per_tile(B, D, itemsize, is_f32, vmem_budget_bytes,
                          target_tile_bytes, max_rows_per_tile):
    # Sublane packing granularity: 8 rows (f32), 16 (bf16), 32 (int8).
    row_align = max(8, 32 // itemsize)

    # VMEM bytes consumed per tile row:
    #   2 * D * itemsize   double-buffered x block
    #   4 * D              f32 upcast copy (skipped when x is already f32)
    #   4 * D              f32 x*w product temporary
    #   2 * 128 * 4        (TB, 1) f32-ish output block, lane-padded to 128,
    #                      double-buffered
    per_row = 2 * D * itemsize + (0 if is_f32 else 4 * D) + 4 * D + 2 * 128 * 4
    # Resident (1, D) weight block: sublane-padded to 8 rows, double-buffered.
    fixed = 2 * 8 * D * 4

    tb_vmem = _round_down_pos(max(0, vmem_budget_bytes - fixed) // per_row,
                              row_align)
    tb_target = _round_down_pos(target_tile_bytes // (D * itemsize), row_align)
    tb = min(tb_vmem, tb_target, _round_up(B, row_align))

    # Keep >= ~4 grid steps when the batch allows it (v7x: 2 TensorCores share
    # the "parallel" batch axis), but never shrink a tile below ~1 MiB for it.
    if B >= 4 * row_align:
        one_mib_rows = _round_down_pos((1 << 20) // (D * itemsize), row_align)
        tb = min(tb, max(one_mib_rows, _round_up(pl.cdiv(B, 4), row_align)))

    if max_rows_per_tile is not None:
        tb = min(tb, _round_down_pos(max_rows_per_tile, row_align))
    return max(row_align, tb)


def lrmodel_forward(x, weight, bias, *, target_tile_bytes=8 << 20,
                    vmem_budget_bytes=None, vmem_limit_bytes=None,
                    max_rows_per_tile=None):
    """y = x @ weight.T + bias  (PyTorch nn.Linear(input_dim, 1) semantics).

    x:      (B, D)
    weight: (1, D) (PyTorch layout; kept as (1, D) -- no (D, 1) transpose)
    bias:   (1,)
    returns (B, 1)
    """
    B, D = x.shape
    itemsize = jnp.dtype(x.dtype).itemsize
    is_f32 = x.dtype == jnp.float32

    if vmem_budget_bytes is None:
        if vmem_limit_bytes is not None:
            vmem_budget_bytes = max(4 << 20, vmem_limit_bytes - (4 << 20))
        else:
            vmem_budget_bytes = _default_vmem_budget_bytes()

    TB = _select_rows_per_tile(B, D, itemsize, is_f32, vmem_budget_bytes,
                               target_tile_bytes, max_rows_per_tile)

    w = weight.reshape(1, D)
    b = bias.reshape(1).astype(jnp.float32)   # single scalar; lives in SMEM

    out = pl.pallas_call(
        _linear_kernel,
        out_shape=jax.ShapeDtypeStruct((B, 1), x.dtype),
        grid=(pl.cdiv(B, TB),),                       # ragged last block OK
        in_specs=[
            pl.BlockSpec((TB, D), lambda i: (i, 0)),  # streamed, pipelined
            pl.BlockSpec((1, D), lambda i: (0, 0)),   # weight fetched once
            pl.BlockSpec(memory_space=pltpu.MemorySpace.SMEM),  # bias scalar
        ],
        out_specs=pl.BlockSpec((TB, 1), lambda i: (i, 0)),
        compiler_params=pltpu.CompilerParams(
            dimension_semantics=("parallel",),
            vmem_limit_bytes=vmem_limit_bytes,        # None -> compiler default
        ),
    )(x, w, b)

    return out


if __name__ == "__main__":
    key = jax.random.PRNGKey(0)
    kx, kw, kb, kx2 = jax.random.split(key, 4)

    batch, input_dim = 8, 32

    # Deterministic parameter init (PyTorch-style uniform bound 1/sqrt(D)).
    bound = 1.0 / jnp.sqrt(jnp.float32(input_dim))
    weight = jax.random.uniform(kw, (1, input_dim), jnp.float32, -bound, bound)
    bias = jax.random.uniform(kb, (1,), jnp.float32, -bound, bound)

    # Test 1: plain small batch (single tile).
    x = jax.random.normal(kx, (batch, input_dim), jnp.float32)
    y = lrmodel_forward(x, weight, bias)
    jax.block_until_ready(y)
    y_ref = x @ weight.T + bias
    assert y.shape == (batch, 1)
    assert jnp.allclose(y, y_ref, atol=1e-5, rtol=1e-5)

    # Test 2: non-multiple batch with a forced small tile to exercise the
    # padding-free ragged path (20 rows, TB=8 -> grid of 3, last block
    # overhangs by 4 rows and is masked on writeback).
    x2 = jax.random.normal(kx2, (20, input_dim), jnp.float32)
    y2 = lrmodel_forward(x2, weight, bias, max_rows_per_tile=8)
    jax.block_until_ready(y2)
    y2_ref = x2 @ weight.T + bias
    assert y2.shape == (20, 1)
    assert jnp.allclose(y2, y2_ref, atol=1e-5, rtol=1e-5)

    print("KERNEL_OK")
</pallas_src>

<mosaic_0001>
module attributes {stable_mosaic.version = 11 : i64} {
  func.func @_linear_kernel(%arg0: i32, %arg1: memref<8x32xf32, #tpu.memory_space<vmem>>, %arg2: memref<1x32xf32, #tpu.memory_space<vmem>>, %arg3: memref<1xf32, #tpu.memory_space<smem>>, %arg4: memref<8x1xf32, #tpu.memory_space<vmem>>) attributes {dimension_semantics = [#tpu.dimension_semantics<parallel>], iteration_bounds = array<i64: 1>, scalar_prefetch = 0 : i64, scratch_operands = 0 : i64, tpu.core_type = #tpu.core_type<tc>, window_params = [{transform_indices = @transform_0, window_bounds = array<i64: 8, 32>}, {pipeline_mode = #tpu.pipeline_mode<synchronous>, transform_indices = @transform_1, window_bounds = array<i64: 1, 32>}, {transform_indices = @transform_2, window_bounds = array<i64: 1>}, {transform_indices = @transform_3, window_bounds = array<i64: 8, 1>}]} {
    %c0 = arith.constant 0 : index
    %c0_0 = arith.constant 0 : index
    %0 = vector.load %arg1[%c0, %c0_0] : memref<8x32xf32, #tpu.memory_space<vmem>>, vector<8x32xf32>
    %c0_1 = arith.constant 0 : index
    %c0_2 = arith.constant 0 : index
    %1 = vector.load %arg2[%c0_1, %c0_2] : memref<1x32xf32, #tpu.memory_space<vmem>>, vector<1x32xf32>
    %2 = vector.broadcast %1 : vector<1x32xf32> to vector<8x32xf32>
    %3 = arith.mulf %0, %2 : vector<8x32xf32>
    %cst = arith.constant dense<0.000000e+00> : vector<8xf32>
    %4 = vector.multi_reduction <add>, %3, %cst [1] : vector<8x32xf32> to vector<8xf32>
    %5 = vector.shape_cast %4 : vector<8xf32> to vector<8x1xf32>
    %c0_3 = arith.constant 0 : index
    %6 = memref.load %arg3[%c0_3] : memref<1xf32, #tpu.memory_space<smem>>
    %7 = vector.broadcast %6 : f32 to vector<8x1xf32>
    %8 = arith.addf %5, %7 : vector<8x1xf32>
    %c0_4 = arith.constant 0 : index
    %c0_5 = arith.constant 0 : index
    %9 = vector.load %arg4[%c0_4, %c0_5] : memref<8x1xf32, #tpu.memory_space<vmem>>, vector<8x1xf32>
    tpu.vector_store %arg4[%c0_4, %c0_5], %8 {strides = array<i32>} : memref<8x1xf32, #tpu.memory_space<vmem>>, vector<8x1xf32>,
    return
  }
  func.func @transform_0(%arg0: i32) -> (i32, i32) {
    %c0_i32 = arith.constant 0 : i32
    %c0_i32_0 = arith.constant 0 : i32
    return %arg0, %c0_i32 : i32, i32
  }
  func.func @transform_1(%arg0: i32) -> (i32, i32) {
    %c0_i32 = arith.constant 0 : i32
    %c0_i32_0 = arith.constant 0 : i32
    %c0_i32_1 = arith.constant 0 : i32
    return %c0_i32, %c0_i32_0 : i32, i32
  }
  func.func @transform_2(%arg0: i32) -> i32 {
    %c0_i32 = arith.constant 0 : i32
    %c0_i32_0 = arith.constant 0 : i32
    return %c0_i32 : i32
  }
  func.func @transform_3(%arg0: i32) -> (i32, i32) {
    %c0_i32 = arith.constant 0 : i32
    %c0_i32_0 = arith.constant 0 : i32
    return %arg0, %c0_i32 : i32, i32
  }
}

</mosaic_0001>

<bundles_post_ra>
// kernel: tpu_custom_call.1
= control target key start
LH: loop header
LB: loop body
LE: loop exit
PB: predicated region body
PF: predicated region fallthrough
CT: control target
= control target key end

     0   :  { %9 = vsyncpa [#allocation4], 0  ;;  %s74_s12 = smov [#allocation3]   ;;  %s107_s0 = inlined_call_operand.hbm [shape: f32[8,32], index: 0, kind: input, shape index: {}]   ;;  %s108_s1 = inlined_call_operand.vmem [shape: f32[1,32], index: 1, kind: input, shape index: {}]   ;;  %s109_s2 = inlined_call_operand.<no memory space> [shape: f32[1], index: 2, kind: input, shape index: {}]   ;;  %s110_s3 = inlined_call_operand.vmem [shape: f32[8,1], index: 3, kind: output, shape index: {}]  }
   0x1   :  { %s16_s13 = sshll.u32 %s74_s12, 4  ;;  %s17_s13 = int_to_ptr.vmem [resolvable:$true] %s16_s13 }
   0x2   :  { %s60_s14 = scalar_lea.vmem %s17_s13, 128  ;;  %p65_p1 = scmp.lt.s32.totalorder %s17_s13, %s17_s13 }
   0x3   :  { %p61_p0 = scmp.ne.s32.totalorder %s17_s13, %s60_s14  ;;  %p66_p2 = scmp.lt.s32.totalorder %s60_s14, %s60_s14 }
   0x5   :  { %p67_p3 = por %p66_p2, %p65_p1 }
   0x7   :  { %p68_p4 = pnand %p67_p3, %p61_p0 }
   0x9   :  { %71 = shalt.err (!%p68_p4)
}
   0xa   :  { %19 = dma.hbm_to_vmem [thread:$0]  %s107_s0, 128, %s17_s13, [#allocation4]  }
   0xb   :  { %72 = dma.done.wait [#allocation4], 128  }
   0xc   :  { %73 = vsyncadd [#allocation4], 4294967168  ;;  %v27_v0 = vld [vmem:[#allocation3] sm:$0xff]  ;;  %vm36_vm0 = vcmask 261120   ;;  %v41_v4 = vstv %s109_s2  ;;  %vm43_vm1 = vcmask 7168  }
   0xd   :  { %v50_v1 = vld [vmem:[%s108_s1] ss:$0 sm:$0xff] }
   0xe   :  { %v35_v2 = vmul.f32 %v50_v1, %v27_v0 }
  0x10   :  { %v37_v3 = vsel %vm36_vm0, %v35_v2, 0.0 }
  0x11   :  { %38 = vadd.xlane.f32.xlu0 %v37_v3 }
  0x9a   :  { %v39_v5 = vpop.xlane.xlu0 %38 }
  0x9b   :  { %v42_v6 = vadd.f32 %v41_v4, %v39_v5 }
  0x9d   :  { %44 = vst.msk [vmem:[%s110_s3] sm:$0xff] %vm43_vm1, %v42_v6 }
  0x9e   :  { %49 = vsyncpa [#allocation4], 1 }

</bundles_post_ra>
